<compile_context>
chip_gen: v6e
topology: v6e:2x2x1
jax: 0.10.0
libtpu: 0.0.40
codegen_flags: <defaults>
</compile_context>

<pallas_src>
import functools

import jax
import jax.numpy as jnp
from jax.experimental import pallas as pl
from jax.experimental.pallas import tpu as pltpu

LANE = 128


def _round_up(x, m):
    return ((x + m - 1) // m) * m


def _choose_tb(B, batch_tile):
    """Batch tile: sublane-aligned, and >=2 grid steps when B > 8 (v7x 2 TCs)."""
    if B <= 8:
        tb = 8
    else:
        tb = max(8, _round_up(pl.cdiv(B, 2), 8))
    return max(8, min(batch_tile, tb))


# --------------------------------------------------------------------------- #
# Kernel 1: single forward evaluation f(t, x)  (module's forward semantics)
# --------------------------------------------------------------------------- #
def odefunc_kernel(x_ref, w1_ref, b1_ref, w2_ref, b2_ref, w3_ref, b3_ref,
                   out_ref):
    """Fused 3-layer MLP for one batch tile. Weights lane-aligned (128)."""
    wdt = w1_ref.dtype

    # Layer 1: [TB, K] x [K, 128] -> f32 accumulate, bias+ReLU in f32 (VPU).
    h1 = jnp.dot(x_ref[...], w1_ref[...], preferred_element_type=jnp.float32)
    h1 = jnp.maximum(h1 + b1_ref[...], 0.0)                          # [TB, 128]

    # Layer 2: [TB, 128] x [128, 128].
    h2 = jnp.dot(h1.astype(wdt), w2_ref[...],
                 preferred_element_type=jnp.float32)
    h2 = jnp.maximum(h2 + b2_ref[...], 0.0)                          # [TB, 128]

    # Layer 3: padded columns of w3/b3 are exactly 0, so the action slots
    # (and all lane padding) come out as exact 0.0.
    dxdt = jnp.dot(h2.astype(wdt), w3_ref[...],
                   preferred_element_type=jnp.float32) + b3_ref[...]  # [TB, 128]

    # Single full-width, unmasked (lane-dense) store.
    out_ref[...] = dxdt.astype(out_ref.dtype)


def odefunc_forward(t, x_aug, padded_params, *, state_dim, action_dim,
                    batch_tile=1024, out_dtype=jnp.float32,
                    trim_output=True):
    """Pallas ODEFunc forward. `t` is unused by the module (kept for parity).

    out_dtype=jnp.bfloat16 and trim_output=False minimize output HBM traffic
    when the consumer can read the padded (B,128) slab (cols >= S+A are 0)."""
    del t
    w1, b1, w2, b2, w3, b3 = padded_params
    B, K = x_aug.shape
    out_dim = state_dim + action_dim
    assert K == out_dim
    H_pad = w1.shape[1]
    OUT_pad = w3.shape[1]

    TB = _choose_tb(B, batch_tile)
    B_pad = _round_up(B, TB)
    x_p = x_aug.astype(w1.dtype)                      # cast once, in the wrapper
    if B_pad != B:
        x_p = jnp.pad(x_p, ((0, B_pad - B), (0, 0)))

    grid = (B_pad // TB,)

    out_padded = pl.pallas_call(
        odefunc_kernel,
        out_shape=jax.ShapeDtypeStruct((B_pad, OUT_pad), out_dtype),
        grid_spec=pltpu.PrefetchScalarGridSpec(
            num_scalar_prefetch=0,
            grid=grid,
            in_specs=[
                pl.BlockSpec((TB, K), lambda i: (i, 0)),          # x: batch-tiled
                pl.BlockSpec((K, H_pad), lambda i: (0, 0)),       # w1: resident
                pl.BlockSpec((1, H_pad), lambda i: (0, 0)),       # b1
                pl.BlockSpec((H_pad, H_pad), lambda i: (0, 0)),   # w2
                pl.BlockSpec((1, H_pad), lambda i: (0, 0)),       # b2
                pl.BlockSpec((H_pad, OUT_pad), lambda i: (0, 0)),  # w3
                pl.BlockSpec((1, OUT_pad), lambda i: (0, 0)),     # b3
            ],
            out_specs=pl.BlockSpec((TB, OUT_pad), lambda i: (i, 0)),
        ),
        compiler_params=pltpu.CompilerParams(
            dimension_semantics=("parallel",)),
    )(x_p, w1, b1, w2, b2, w3, b3)

    if trim_output:
        return out_padded[:B, :out_dim]
    return out_padded        # (B_pad, 128) slab; columns >= out_dim are exact 0


# --------------------------------------------------------------------------- #
# Kernel 2: fused explicit-Euler integrate (solver sub-steps in ONE pallas_call)
# --------------------------------------------------------------------------- #
def odefunc_euler_kernel(x_ref, w1_ref, b1_ref, w2_ref, b2_ref, w3_ref, b3_ref,
                         out_ref, *, dt):
    """One Euler sub-step; carried state lives in the resident out block."""
    s = pl.program_id(1)
    wdt = w1_ref.dtype

    @pl.when(s == 0)
    def _():
        out_ref[...] = x_ref[...].astype(out_ref.dtype)

    xk = out_ref[...]                                                 # [TB, 128]
    h1 = jnp.dot(xk.astype(wdt), w1_ref[...],
                 preferred_element_type=jnp.float32)
    h1 = jnp.maximum(h1 + b1_ref[...], 0.0)
    h2 = jnp.dot(h1.astype(wdt), w2_ref[...],
                 preferred_element_type=jnp.float32)
    h2 = jnp.maximum(h2 + b2_ref[...], 0.0)
    dxdt = jnp.dot(h2.astype(wdt), w3_ref[...],
                   preferred_element_type=jnp.float32) + b3_ref[...]  # [TB, 128]
    # dxdt columns >= state_dim are exactly 0, so action (and padding) columns
    # of the carried state never change — matches cat([dxdt, zeros], -1).
    out_ref[...] = (xk + dt * dxdt).astype(out_ref.dtype)


def odefunc_integrate_euler(x_aug, padded_params, *, dt, n_steps, state_dim,
                            action_dim, batch_tile=1024):
    """n_steps explicit-Euler steps of dx/dt = f(t,x) fused in one pallas_call.

    Weights stay VMEM-resident across all sub-steps (constant index_maps on an
    'arbitrary' step axis); one dispatch per integrate instead of per f-eval."""
    w1, b1, w2, b2, w3, b3 = padded_params
    B, K = x_aug.shape
    assert K == state_dim + action_dim
    H_pad = w1.shape[1]
    OUT_pad = w3.shape[1]
    wdt = w1.dtype

    # Pad w1's input dim to a full lane width once (rows >= K are exact zeros)
    # so the carried state is a lane-dense (TB, 128) block: no narrow slices.
    w1_full = jnp.zeros((OUT_pad, H_pad), wdt).at[:K, :].set(w1)

    TB = _choose_tb(B, batch_tile)
    B_pad = _round_up(B, TB)
    x_p = jnp.zeros((B_pad, OUT_pad), wdt).at[:B, :K].set(x_aug.astype(wdt))

    grid = (B_pad // TB, n_steps)
    kern = functools.partial(odefunc_euler_kernel, dt=float(dt))

    out_padded = pl.pallas_call(
        kern,
        out_shape=jax.ShapeDtypeStruct((B_pad, OUT_pad), jnp.float32),
        grid_spec=pltpu.PrefetchScalarGridSpec(
            num_scalar_prefetch=0,
            grid=grid,
            in_specs=[
                pl.BlockSpec((TB, OUT_pad), lambda i, s: (i, 0)),     # x0
                pl.BlockSpec((OUT_pad, H_pad), lambda i, s: (0, 0)),  # w1 (padded)
                pl.BlockSpec((1, H_pad), lambda i, s: (0, 0)),        # b1
                pl.BlockSpec((H_pad, H_pad), lambda i, s: (0, 0)),    # w2
                pl.BlockSpec((1, H_pad), lambda i, s: (0, 0)),        # b2
                pl.BlockSpec((H_pad, OUT_pad), lambda i, s: (0, 0)),  # w3
                pl.BlockSpec((1, OUT_pad), lambda i, s: (0, 0)),      # b3
            ],
            out_specs=pl.BlockSpec((TB, OUT_pad), lambda i, s: (i, 0)),
        ),
        compiler_params=pltpu.CompilerParams(
            dimension_semantics=("parallel", "arbitrary")),
    )(x_p, w1_full, b1, w2, b2, w3, b3)

    return out_padded[:B, :K]


# --------------------------------------------------------------------------- #
# Parameters
# --------------------------------------------------------------------------- #
def init_params(key, state_dim, action_dim, hidden=100):
    """PyTorch-style uniform(+-1/sqrt(fan_in)) init, (in, out) layout. Unpadded."""
    dims = [(state_dim + action_dim, hidden), (hidden, hidden),
            (hidden, state_dim)]
    params = []
    for (fan_in, fan_out) in dims:
        key, kw, kb = jax.random.split(key, 3)
        bound = 1.0 / jnp.sqrt(fan_in)
        w = jax.random.uniform(kw, (fan_in, fan_out), jnp.float32, -bound, bound)
        b = jax.random.uniform(kb, (1, fan_out), jnp.float32, -bound, bound)
        params.extend([w, b])
    return tuple(params)


def pad_params(params, *, compute_dtype=jnp.bfloat16):
    """Zero-pad weights/biases to 128-lane-aligned shapes (done once, offline).

    compute_dtype applies to matmul operands only (f32 MXU accumulation, f32
    bias/ReLU epilogue); bf16 is the default on all TPU generations. Use
    compute_dtype=jnp.float32 for bit-tight results."""
    w1, b1, w2, b2, w3, b3 = params
    K, H = w1.shape
    S = w3.shape[1]
    H_pad = _round_up(H, LANE)
    OUT_pad = LANE  # state_dim + zero action cols padded to one full lane width

    w1p = jnp.zeros((K, H_pad), jnp.float32).at[:, :H].set(w1)
    b1p = jnp.zeros((1, H_pad), jnp.float32).at[:, :H].set(b1)
    w2p = jnp.zeros((H_pad, H_pad), jnp.float32).at[:H, :H].set(w2)
    b2p = jnp.zeros((1, H_pad), jnp.float32).at[:, :H].set(b2)
    w3p = jnp.zeros((H_pad, OUT_pad), jnp.float32).at[:H, :S].set(w3)
    b3p = jnp.zeros((1, OUT_pad), jnp.float32).at[:, :S].set(b3)

    # Biases stay f32 (VPU epilogue); only matmul operands take compute_dtype.
    return (w1p.astype(compute_dtype), b1p,
            w2p.astype(compute_dtype), b2p,
            w3p.astype(compute_dtype), b3p)


# --------------------------------------------------------------------------- #
# Pure-JAX references (unpadded params)
# --------------------------------------------------------------------------- #
def odefunc_reference(t, x_aug, params, *, state_dim, action_dim):
    del t
    w1, b1, w2, b2, w3, b3 = params
    state = x_aug[:, :state_dim]
    action = x_aug[:, state_dim:]
    x = jnp.concatenate([state, action], axis=-1)
    h = jnp.maximum(x @ w1 + b1, 0.0)
    h = jnp.maximum(h @ w2 + b2, 0.0)
    dxdt = h @ w3 + b3
    return jnp.concatenate([dxdt, jnp.zeros_like(action)], axis=-1)


def euler_reference(x_aug, params, *, dt, n_steps, state_dim, action_dim):
    x = x_aug
    for _ in range(n_steps):
        x = x + dt * odefunc_reference(0.0, x, params,
                                       state_dim=state_dim,
                                       action_dim=action_dim)
    return x


if __name__ == "__main__":
    state_dim, action_dim, batch = 8, 4, 8

    key = jax.random.PRNGKey(0)
    key, kx = jax.random.split(key)
    x_aug = jax.random.normal(kx, (batch, state_dim + action_dim), jnp.float32)
    t = jnp.float32(0.0)  # unused by forward, present for API parity

    params = init_params(key, state_dim, action_dim)

    # ---- f32 path: exactness check ------------------------------------- #
    padded_f32 = pad_params(params, compute_dtype=jnp.float32)
    fwd = functools.partial(odefunc_forward,
                            state_dim=state_dim, action_dim=action_dim)
    out_f32 = jax.block_until_ready(fwd(t, x_aug, padded_f32))
    ref = odefunc_reference(t, x_aug, params,
                            state_dim=state_dim, action_dim=action_dim)
    assert out_f32.shape == (batch, state_dim + action_dim)
    assert jnp.allclose(out_f32, ref, atol=1e-5, rtol=1e-5)
    assert jnp.all(out_f32[:, state_dim:] == 0.0)

    # ---- default (bf16 matmul operands) path ---------------------------- #
    padded_bf16 = pad_params(params)  # bf16 default on all generations
    out_bf16 = jax.block_until_ready(fwd(t, x_aug, padded_bf16))
    assert jnp.allclose(out_bf16, ref, atol=5e-2, rtol=5e-2)
    assert jnp.all(out_bf16[:, state_dim:] == 0.0)

    # ---- fused Euler integrate (solver sub-steps in one pallas_call) ---- #
    n_steps, dt = 8, 0.05
    out_int = jax.block_until_ready(
        odefunc_integrate_euler(x_aug, padded_f32, dt=dt, n_steps=n_steps,
                                state_dim=state_dim, action_dim=action_dim))
    ref_int = euler_reference(x_aug, params, dt=dt, n_steps=n_steps,
                              state_dim=state_dim, action_dim=action_dim)
    assert out_int.shape == (batch, state_dim + action_dim)
    assert jnp.allclose(out_int, ref_int, atol=1e-4, rtol=1e-4)
    # Action slots are never modified by the integrator (d(action)/dt == 0).
    assert jnp.all(out_int[:, state_dim:] == x_aug[:, state_dim:])

    print("KERNEL_OK")
</pallas_src>

<mosaic_0001>
module attributes {stable_mosaic.version = 11 : i64} {
  func.func @odefunc_kernel(%arg0: i32, %arg1: memref<8x12xf32, #tpu.memory_space<vmem>>, %arg2: memref<12x128xf32, #tpu.memory_space<vmem>>, %arg3: memref<1x128xf32, #tpu.memory_space<vmem>>, %arg4: memref<128x128xf32, #tpu.memory_space<vmem>>, %arg5: memref<1x128xf32, #tpu.memory_space<vmem>>, %arg6: memref<128x128xf32, #tpu.memory_space<vmem>>, %arg7: memref<1x128xf32, #tpu.memory_space<vmem>>, %arg8: memref<8x128xf32, #tpu.memory_space<vmem>>) attributes {dimension_semantics = [#tpu.dimension_semantics<parallel>], iteration_bounds = array<i64: 1>, scalar_prefetch = 0 : i64, scratch_operands = 0 : i64, tpu.core_type = #tpu.core_type<tc>, window_params = [{transform_indices = @transform_0, window_bounds = array<i64: 8, 12>}, {pipeline_mode = #tpu.pipeline_mode<synchronous>, transform_indices = @transform_1, window_bounds = array<i64: 12, 128>}, {pipeline_mode = #tpu.pipeline_mode<synchronous>, transform_indices = @transform_2, window_bounds = array<i64: 1, 128>}, {pipeline_mode = #tpu.pipeline_mode<synchronous>, transform_indices = @transform_3, window_bounds = array<i64: 128, 128>}, {pipeline_mode = #tpu.pipeline_mode<synchronous>, transform_indices = @transform_4, window_bounds = array<i64: 1, 128>}, {pipeline_mode = #tpu.pipeline_mode<synchronous>, transform_indices = @transform_5, window_bounds = array<i64: 128, 128>}, {pipeline_mode = #tpu.pipeline_mode<synchronous>, transform_indices = @transform_6, window_bounds = array<i64: 1, 128>}, {transform_indices = @transform_7, window_bounds = array<i64: 8, 128>}]} {
    %c0 = arith.constant 0 : index
    %c0_0 = arith.constant 0 : index
    %0 = vector.load %arg1[%c0, %c0_0] : memref<8x12xf32, #tpu.memory_space<vmem>>, vector<8x12xf32>
    %c0_1 = arith.constant 0 : index
    %c0_2 = arith.constant 0 : index
    %1 = vector.load %arg2[%c0_1, %c0_2] : memref<12x128xf32, #tpu.memory_space<vmem>>, vector<12x128xf32>
    %cst = arith.constant dense<0.000000e+00> : vector<8x128xf32>
    %2 = tpu.matmul %0, %1, %cst {dimension_numbers = #tpu.dot_dimension_numbers<[1], [0], [0], [1], [0, 0, 1, 1], [], []>} : vector<8x12xf32>, vector<12x128xf32>, vector<8x128xf32> -> vector<8x128xf32>
    %c0_3 = arith.constant 0 : index
    %c0_4 = arith.constant 0 : index
    %3 = vector.load %arg3[%c0_3, %c0_4] : memref<1x128xf32, #tpu.memory_space<vmem>>, vector<1x128xf32>
    %4 = vector.broadcast %3 : vector<1x128xf32> to vector<8x128xf32>
    %5 = arith.addf %2, %4 : vector<8x128xf32>
    %cst_5 = arith.constant 0.000000e+00 : f32
    %6 = vector.broadcast %cst_5 : f32 to vector<8x128xf32>
    %7 = arith.maximumf %5, %6 : vector<8x128xf32>
    %c0_6 = arith.constant 0 : index
    %c0_7 = arith.constant 0 : index
    %8 = vector.load %arg4[%c0_6, %c0_7] : memref<128x128xf32, #tpu.memory_space<vmem>>, vector<128x128xf32>
    %cst_8 = arith.constant dense<0.000000e+00> : vector<8x128xf32>
    %9 = tpu.matmul %7, %8, %cst_8 {dimension_numbers = #tpu.dot_dimension_numbers<[1], [0], [0], [1], [0, 0, 1, 1], [], []>} : vector<8x128xf32>, vector<128x128xf32>, vector<8x128xf32> -> vector<8x128xf32>
    %c0_9 = arith.constant 0 : index
    %c0_10 = arith.constant 0 : index
    %10 = vector.load %arg5[%c0_9, %c0_10] : memref<1x128xf32, #tpu.memory_space<vmem>>, vector<1x128xf32>
    %11 = vector.broadcast %10 : vector<1x128xf32> to vector<8x128xf32>
    %12 = arith.addf %9, %11 : vector<8x128xf32>
    %cst_11 = arith.constant 0.000000e+00 : f32
    %13 = vector.broadcast %cst_11 : f32 to vector<8x128xf32>
    %14 = arith.maximumf %12, %13 : vector<8x128xf32>
    %c0_12 = arith.constant 0 : index
    %c0_13 = arith.constant 0 : index
    %15 = vector.load %arg6[%c0_12, %c0_13] : memref<128x128xf32, #tpu.memory_space<vmem>>, vector<128x128xf32>
    %cst_14 = arith.constant dense<0.000000e+00> : vector<8x128xf32>
    %16 = tpu.matmul %14, %15, %cst_14 {dimension_numbers = #tpu.dot_dimension_numbers<[1], [0], [0], [1], [0, 0, 1, 1], [], []>} : vector<8x128xf32>, vector<128x128xf32>, vector<8x128xf32> -> vector<8x128xf32>
    %c0_15 = arith.constant 0 : index
    %c0_16 = arith.constant 0 : index
    %17 = vector.load %arg7[%c0_15, %c0_16] : memref<1x128xf32, #tpu.memory_space<vmem>>, vector<1x128xf32>
    %18 = vector.broadcast %17 : vector<1x128xf32> to vector<8x128xf32>
    %19 = arith.addf %16, %18 : vector<8x128xf32>
    %c0_17 = arith.constant 0 : index
    %c0_18 = arith.constant 0 : index
    %20 = vector.load %arg8[%c0_17, %c0_18] : memref<8x128xf32, #tpu.memory_space<vmem>>, vector<8x128xf32>
    tpu.vector_store %arg8[%c0_17, %c0_18], %19 {strides = array<i32>} : memref<8x128xf32, #tpu.memory_space<vmem>>, vector<8x128xf32>,
    return
  }
  func.func @transform_0(%arg0: i32) -> (i32, i32) {
    %c0_i32 = arith.constant 0 : i32
    %c0_i32_0 = arith.constant 0 : i32
    return %arg0, %c0_i32 : i32, i32
  }
  func.func @transform_1(%arg0: i32) -> (i32, i32) {
    %c0_i32 = arith.constant 0 : i32
    %c0_i32_0 = arith.constant 0 : i32
    %c0_i32_1 = arith.constant 0 : i32
    return %c0_i32, %c0_i32_0 : i32, i32
  }
  func.func @transform_2(%arg0: i32) -> (i32, i32) {
    %c0_i32 = arith.constant 0 : i32
    %c0_i32_0 = arith.constant 0 : i32
    %c0_i32_1 = arith.constant 0 : i32
    return %c0_i32, %c0_i32_0 : i32, i32
  }
  func.func @transform_3(%arg0: i32) -> (i32, i32) {
    %c0_i32 = arith.constant 0 : i32
    %c0_i32_0 = arith.constant 0 : i32
    %c0_i32_1 = arith.constant 0 : i32
    return %c0_i32, %c0_i32_0 : i32, i32
  }
  func.func @transform_4(%arg0: i32) -> (i32, i32) {
    %c0_i32 = arith.constant 0 : i32
    %c0_i32_0 = arith.constant 0 : i32
    %c0_i32_1 = arith.constant 0 : i32
    return %c0_i32, %c0_i32_0 : i32, i32
  }
  func.func @transform_5(%arg0: i32) -> (i32, i32) {
    %c0_i32 = arith.constant 0 : i32
    %c0_i32_0 = arith.constant 0 : i32
    %c0_i32_1 = arith.constant 0 : i32
    return %c0_i32, %c0_i32_0 : i32, i32
  }
  func.func @transform_6(%arg0: i32) -> (i32, i32) {
    %c0_i32 = arith.constant 0 : i32
    %c0_i32_0 = arith.constant 0 : i32
    %c0_i32_1 = arith.constant 0 : i32
    return %c0_i32, %c0_i32_0 : i32, i32
  }
  func.func @transform_7(%arg0: i32) -> (i32, i32) {
    %c0_i32 = arith.constant 0 : i32
    %c0_i32_0 = arith.constant 0 : i32
    return %arg0, %c0_i32 : i32, i32
  }
}

</mosaic_0001>

<bundles_post_ra>
// kernel: tpu_custom_call.1
= control target key start
LH: loop header
LB: loop body
LE: loop exit
PB: predicated region body
PF: predicated region fallthrough
CT: control target
= control target key end

     0   :  { %12 = vsyncpa [#allocation3], 0  ;;  %s732_s0 = inlined_call_operand.hbm [shape: f32[8,12], index: 0, kind: input, shape index: {}]   ;;  %s733_s1 = inlined_call_operand.hbm [shape: f32[12,128], index: 1, kind: input, shape index: {}]   ;;  %s734_s2 = inlined_call_operand.vmem [shape: f32[1,128], index: 2, kind: input, shape index: {}]   ;;  %s735_s3 = inlined_call_operand.hbm [shape: f32[128,128], index: 3, kind: input, shape index: {}]   ;;  %s736_s4 = inlined_call_operand.vmem [shape: f32[1,128], index: 4, kind: input, shape index: {}]   ;;  %s737_s5 = inlined_call_operand.hbm [shape: f32[128,128], index: 5, kind: input, shape index: {}]   ;;  %s738_s6 = inlined_call_operand.vmem [shape: f32[1,128], index: 6, kind: input, shape index: {}]   ;;  %s739_s7 = inlined_call_operand.hbm [shape: f32[8,128], index: 7, kind: output, shape index: {}]  }
   0x1   :  { %13 = vsyncpa [#allocation6], 0 }
   0x2   :  { %14 = vsyncpa [#allocation9], 0 }
   0x3   :  { %15 = vsyncpa [#allocation4], 0  ;;  %s610_s24 = smov [#allocation5]  }
   0x4   :  { %s31_s25 = sshll.u32 %s610_s24, 4  ;;  %s32_s25 = int_to_ptr.vmem [resolvable:$true] %s31_s25 }
   0x5   :  { %s510_s26 = scalar_lea.vmem %s32_s25, 256  ;;  %p515_p1 = scmp.lt.s32.totalorder %s32_s25, %s32_s25 }
   0x6   :  { %p511_p0 = scmp.ne.s32.totalorder %s32_s25, %s510_s26  ;;  %p516_p2 = scmp.lt.s32.totalorder %s510_s26, %s510_s26 }
   0x8   :  { %p517_p3 = por %p516_p2, %p515_p1 }
   0xa   :  { %p518_p4 = pnand %p517_p3, %p511_p0 }
   0xc   :  { %521 = shalt.err (!%p518_p4)
}
   0xd   :  { %s611_s27 = smov 128   ;;  %s612_s28 = smov 8  }
   0xe   :  { %37 = dma.hbm_to_vmem [thread:$0]  %s733_s1, 256, %s32_s25, [#allocation6], %s611_s27, %s611_s27, %s612_s28  }
   0xf   :  { %s613_s8 = smov [#allocation2]   ;;  %s614_s10 = smov [#allocation7]  }
  0x10   :  { %s22_s9 = sshll.u32 %s613_s8, 4  ;;  %s45_s11 = sshll.u32 %s614_s10, 4  ;;  %s23_s9 = int_to_ptr.vmem [resolvable:$true] %s22_s9  ;;  %s46_s11 = int_to_ptr.vmem [resolvable:$true] %s45_s11 }
  0x11   :  { %s530_s12 = scalar_lea.vmem %s23_s9, 128  ;;  %p535_p6 = scmp.lt.s32.totalorder %s23_s9, %s23_s9 }
  0x12   :  { %p531_p5 = scmp.ne.s32.totalorder %s23_s9, %s530_s12  ;;  %p536_p7 = scmp.lt.s32.totalorder %s530_s12, %s530_s12 }
  0x14   :  { %p537_p8 = por %p536_p7, %p535_p6 }
  0x16   :  { %p538_p9 = pnand %p537_p8, %p531_p5 }
  0x18   :  { %541 = shalt.err (!%p538_p9)
}
  0x19   :  { %25 = dma.hbm_to_vmem [thread:$0]  %s732_s0, 128, %s23_s9, [#allocation3]  }
  0x1a   :  { %s550_s15 = scalar_lea.vmem %s46_s11, 2048  ;;  %p555_p11 = scmp.lt.s32.totalorder %s46_s11, %s46_s11 }
  0x1b   :  { %p551_p10 = scmp.ne.s32.totalorder %s46_s11, %s550_s15  ;;  %p556_p12 = scmp.lt.s32.totalorder %s550_s15, %s550_s15 }
  0x1d   :  { %p557_p13 = por %p556_p12, %p555_p11 }
  0x1f   :  { %p558_p0 = pnand %p557_p13, %p551_p10 }
  0x21   :  { %561 = shalt.err (!%p558_p0)
}
  0x22   :  { %51 = dma.hbm_to_vmem [thread:$0]  %s735_s3, 2048, %s46_s11, [#allocation6], %s611_s27, %s611_s27, %s612_s28  }
  0x23   :  { %s615_s17 = smov [#allocation8]  }
  0x24   :  { %s59_s18 = sshll.u32 %s615_s17, 4  ;;  %s60_s18 = int_to_ptr.vmem [resolvable:$true] %s59_s18 }
  0x25   :  { %s570_s19 = scalar_lea.vmem %s60_s18, 2048  ;;  %p575_p2 = scmp.lt.s32.totalorder %s60_s18, %s60_s18 }
  0x26   :  { %p571_p1 = scmp.ne.s32.totalorder %s60_s18, %s570_s19  ;;  %p576_p3 = scmp.lt.s32.totalorder %s570_s19, %s570_s19 }
  0x28   :  { %p577_p4 = por %p576_p3, %p575_p2 }
  0x2a   :  { %p578_p5 = pnand %p577_p4, %p571_p1 }
  0x2c   :  { %581 = shalt.err (!%p578_p5)
}
  0x2d   :  { %65 = dma.hbm_to_vmem [thread:$0]  %s737_s5, 2048, %s60_s18, [#allocation9], %s611_s27, %s611_s27, %s612_s28  }
  0x2e   :  { %602 = dma.done.wait [#allocation3], 128  }
  0x2f   :  { %603 = vsyncadd [#allocation3], 4294967168 }
  0x30   :  { %604 = dma.done.wait [#allocation6], 2304  }
  0x31   :  { %605 = vsyncadd [#allocation6], 4294964992 }
  0x32   :  { %606 = dma.done.wait [#allocation9], 2048  }
  0x33   :  { %607 = vsyncadd [#allocation9], 4294965248  ;;  %v616_v0 = vmov 0.0   ;;  %vm617_vm0 = vmmov 0   ;;  %vm94_vm1 = vcmask 1043456   ;;  %v81_v2 = vld [vmem:[#allocation5] sm:$0xff] }
  0x34   :  { %416 = vmatprep.subr.mxu0 %v616_v0  ;;  %420 = vmatprep.mubr.msk.f32.mxu0 %vm617_vm0, %v616_v0  ;;  %v82_v1 = vld [vmem:[#allocation5 + $0x8] sm:$0xf]  ;;  %v80_v3 = vld [vmem:[#allocation2] sm:$0xff]  ;;  %vm90_vm2 = vcmask 97280   ;;  %v183_v5 = vld [vmem:[#allocation7 + $0x70] sm:$0xff]  ;;  %s618_s24 = smov [#allocation10]  }
  0x35   :  { %423 = vmatprep.subr.mxu1 %v616_v0  ;;  %455 = vmatprep.mubr.msk.f32.mxu1 %vm617_vm0, %v616_v0  ;;  %v184_v4 = vld [vmem:[#allocation7 + $0x78] sm:$0xff]  ;;  %v182_v6 = vld [vmem:[#allocation7 + $0x68] sm:$0xff]  ;;  %v181_v7 = vld [vmem:[#allocation7 + $0x60] sm:$0xff]  ;;  %s363_s25 = sshll.u32 %s618_s24, 4  ;;  %s364_s25 = int_to_ptr.vmem [resolvable:$true] %s363_s25 }
  0x36   :  { %417 = vmatpush3.msk.msra.mxu0 %vm94_vm1, %v82_v1  ;;  %424 = vmatpush3.msra.mxu1 %v184_v4  ;;  %v180_v8 = vld [vmem:[#allocation7 + $0x58] sm:$0xff]  ;;  %v179_v9 = vld [vmem:[#allocation7 + $0x50] sm:$0xff]  ;;  %v178_v10 = vld [vmem:[#allocation7 + $0x48] sm:$0xff]  ;;  %s582_s26 = scalar_lea.vmem %s364_s25, 128  ;;  %p587_p7 = scmp.lt.s32.totalorder %s364_s25, %s364_s25 }
  0x37   :  { %418 = vmatprep.subr.mxu0 %v616_v0  ;;  %425 = vmatprep.subr.mxu1 %v616_v0  ;;  %v177_v11 = vld [vmem:[#allocation7 + $0x40] sm:$0xff]  ;;  %v176_v12 = vld [vmem:[#allocation7 + $0x38] sm:$0xff]  ;;  %v175_v13 = vld [vmem:[#allocation7 + $0x30] sm:$0xff]  ;;  %p583_p6 = scmp.ne.s32.totalorder %s364_s25, %s582_s26  ;;  %p588_p8 = scmp.lt.s32.totalorder %s582_s26, %s582_s26 }
  0x38   :  { %419 = vmatpush3.msra.mxu0 %v81_v2  ;;  %426 = vmatpush3.msra.mxu1 %v183_v5  ;;  %v174_v14 = vld [vmem:[#allocation7 + $0x28] sm:$0xff]  ;;  %v173_v15 = vld [vmem:[#allocation7 + $0x20] sm:$0xff]  ;;  %v172_v16 = vld [vmem:[#allocation7 + $0x18] sm:$0xff] }
  0x39   :  { %421 = vmatmul.mubr.msk.f32.vlgmr.msra.gmra.mxu0 %vm90_vm2, %v80_v3  ;;  %427 = vmatprep.subr.mxu1 %v616_v0  ;;  %v171_v17 = vld [vmem:[#allocation7 + $0x10] sm:$0xff]  ;;  %v170_v18 = vld [vmem:[#allocation7 + $0x8] sm:$0xff]  ;;  %v169_v19 = vld [vmem:[#allocation7] sm:$0xff]  ;;  %p589_p9 = por %p588_p8, %p587_p7 }
  0x3a   :  { %458 = vmatprep.subr.mxu0 %v616_v0  ;;  %428 = vmatpush3.msra.mxu1 %v182_v6  ;;  %v278_v20 = vld [vmem:[#allocation8 + $0x78] sm:$0xff]  ;;  %v277_v21 = vld [vmem:[#allocation8 + $0x70] sm:$0xff]  ;;  %v276_v22 = vld [vmem:[#allocation8 + $0x68] sm:$0xff] }
  0x3b   :  { %490 = vmatprep.mubr.msk.f32.mxu0 %vm617_vm0, %v616_v0  ;;  %429 = vmatprep.subr.mxu1 %v616_v0  ;;  %v275_v23 = vld [vmem:[#allocation8 + $0x60] sm:$0xff]  ;;  %v274_v24 = vld [vmem:[#allocation8 + $0x58] sm:$0xff]  ;;  %v273_v25 = vld [vmem:[#allocation8 + $0x50] sm:$0xff]  ;;  %p590_p10 = pnand %p589_p9, %p583_p6 }
  0x3c   :  { %430 = vmatpush3.msra.mxu1 %v181_v7  ;;  %459 = vmatpush3.msra.mxu0 %v278_v20  ;;  %v272_v26 = vld [vmem:[#allocation8 + $0x48] sm:$0xff]  ;;  %v271_v27 = vld [vmem:[#allocation8 + $0x40] sm:$0xff]  ;;  %v270_v28 = vld [vmem:[#allocation8 + $0x38] sm:$0xff] }
  0x3d   :  { %431 = vmatprep.subr.mxu1 %v616_v0  ;;  %460 = vmatprep.subr.mxu0 %v616_v0  ;;  %v269_v29 = vld [vmem:[#allocation8 + $0x30] sm:$0xff]  ;;  %v268_v30 = vld [vmem:[#allocation8 + $0x28] sm:$0xff]  ;;  %v267_v31 = vld [vmem:[#allocation8 + $0x20] sm:$0xff] }
  0x3e   :  { %432 = vmatpush3.msra.mxu1 %v180_v8  ;;  %461 = vmatpush3.msra.mxu0 %v277_v21  ;;  %v266_v32 = vld [vmem:[#allocation8 + $0x18] sm:$0xff]  ;;  %v374_v33 = vld [vmem:[%s734_s2] ss:$0 sm:$0xff]  ;;  %v265_v38 = vld [vmem:[#allocation8 + $0x10] sm:$0xff] }
  0x3f   :  { %433 = vmatprep.subr.mxu1 %v616_v0  ;;  %462 = vmatprep.subr.mxu0 %v616_v0  ;;  %v264_v39 = vld [vmem:[#allocation8 + $0x8] sm:$0xff]  ;;  %v263_v40 = vld [vmem:[#allocation8] sm:$0xff] }
  0x40   :  { %434 = vmatpush3.msra.mxu1 %v179_v9  ;;  %463 = vmatpush3.msra.mxu0 %v276_v22  ;;  %v377_v41 = vld [vmem:[%s736_s4] ss:$0 sm:$0xff] }
  0x41   :  { %435 = vmatprep.subr.mxu1 %v616_v0  ;;  %464 = vmatprep.subr.mxu0 %v616_v0  ;;  %v378_v46 = vld [vmem:[%s738_s6] ss:$0 sm:$0xff] }
  0x42   :  { %436 = vmatpush3.msra.mxu1 %v178_v10  ;;  %465 = vmatpush3.msra.mxu0 %v275_v23 }
  0x43   :  { %437 = vmatprep.subr.mxu1 %v616_v0  ;;  %466 = vmatprep.subr.mxu0 %v616_v0 }
  0x44   :  { %438 = vmatpush3.msra.mxu1 %v177_v11  ;;  %467 = vmatpush3.msra.mxu0 %v274_v24 }
  0x45   :  { %439 = vmatprep.subr.mxu1 %v616_v0  ;;  %468 = vmatprep.subr.mxu0 %v616_v0 }
  0x46   :  { %440 = vmatpush3.msra.mxu1 %v176_v12  ;;  %469 = vmatpush3.msra.mxu0 %v273_v25 }
  0x47   :  { %441 = vmatprep.subr.mxu1 %v616_v0  ;;  %470 = vmatprep.subr.mxu0 %v616_v0 }
  0x48   :  { %442 = vmatpush3.msra.mxu1 %v175_v13  ;;  %471 = vmatpush3.msra.mxu0 %v272_v26 }
  0x49   :  { %443 = vmatprep.subr.mxu1 %v616_v0  ;;  %472 = vmatprep.subr.mxu0 %v616_v0 }
  0x4a   :  { %444 = vmatpush3.msra.mxu1 %v174_v14  ;;  %473 = vmatpush3.msra.mxu0 %v271_v27 }
  0x4b   :  { %445 = vmatprep.subr.mxu1 %v616_v0  ;;  %474 = vmatprep.subr.mxu0 %v616_v0 }
  0x4c   :  { %446 = vmatpush3.msra.mxu1 %v173_v15  ;;  %475 = vmatpush3.msra.mxu0 %v270_v28 }
  0x4d   :  { %447 = vmatprep.subr.mxu1 %v616_v0  ;;  %476 = vmatprep.subr.mxu0 %v616_v0 }
  0x4e   :  { %448 = vmatpush3.msra.mxu1 %v172_v16  ;;  %477 = vmatpush3.msra.mxu0 %v269_v29 }
  0x4f   :  { %449 = vmatprep.subr.mxu1 %v616_v0  ;;  %478 = vmatprep.subr.mxu0 %v616_v0 }
  0x50   :  { %450 = vmatpush3.msra.mxu1 %v171_v17  ;;  %479 = vmatpush3.msra.mxu0 %v268_v30 }
  0x51   :  { %451 = vmatprep.subr.mxu1 %v616_v0  ;;  %480 = vmatprep.subr.mxu0 %v616_v0 }
  0x52   :  { %452 = vmatpush3.msra.mxu1 %v170_v18  ;;  %481 = vmatpush3.msra.mxu0 %v267_v31 }
  0x53   :  { %453 = vmatprep.subr.mxu1 %v616_v0  ;;  %482 = vmatprep.subr.mxu0 %v616_v0 }
  0x54   :  { %454 = vmatpush3.msra.mxu1 %v169_v19  ;;  %483 = vmatpush3.msra.mxu0 %v266_v32 }
  0x55   :  { %484 = vmatprep.subr.mxu0 %v616_v0 }
  0x56   :  { %485 = vmatpush3.msra.mxu0 %v265_v38 }
  0x57   :  { %486 = vmatprep.subr.mxu0 %v616_v0 }
  0x58   :  { %487 = vmatpush3.msra.mxu0 %v264_v39 }
  0x59   :  { %488 = vmatprep.subr.mxu0 %v616_v0 }
  0x5a   :  { %489 = vmatpush3.msra.mxu0 %v263_v40 }
  0xf9   :  { %v164_v34 = vpop.f32.mrf.mxu0 }
  0xfa   :  { %v165_v35 = vadd.f32 %v374_v33, %v164_v34 }
  0xfb   :  { %v422_v36 = vpop.f32.mrf.mxu0 }
  0xfc   :  { %v168_v37 = vmax.f32 %v165_v35, 0.0 }
  0xfe   :  { %456 = vmatmul.mubr.f32.vlgmr.msra.gmra.mxu1 %v168_v37 }
 0x1be   :  { %v258_v42 = vpop.f32.mrf.mxu1 }
 0x1bf   :  { %v259_v43 = vadd.f32 %v377_v41, %v258_v42 }
 0x1c0   :  { %v457_v44 = vpop.f32.mrf.mxu1 }
 0x1c1   :  { %v262_v45 = vmax.f32 %v259_v43, 0.0 }
 0x1c3   :  { %491 = vmatmul.mubr.f32.vlgmr.msra.gmra.mxu0 %v262_v45 }
 0x283   :  { %v352_v47 = vpop.f32.mrf.mxu0 }
 0x284   :  { %v353_v48 = vadd.f32 %v378_v46, %v352_v47 }
 0x285   :  { %v492_v49 = vpop.f32.mrf.mxu0 }
 0x286   :  { %356 = vst [vmem:[#allocation10] sm:$0xff] %v353_v48 }
 0x287   :  { %593 = shalt.err (!%p590_p10)
}
 0x288   :  { %366 = dma.vmem_to_hbm [thread:$0]  %s364_s25, 128, %s739_s7, [#allocation4]  }
 0x289   :  { %608 = dma.done.wait [#allocation4], 128  }
 0x28a   :  { %609 = vsyncadd [#allocation4], 4294967168 }
 0x28b   :  { %370 = vsyncpa [#allocation3], 1 }
 0x28c   :  { %371 = vsyncpa [#allocation6], 1 }
 0x28d   :  { %372 = vsyncpa [#allocation9], 1 }
 0x28e   :  { %373 = vsyncpa [#allocation4], 1 }

</bundles_post_ra>
